<compile_context>
chip_gen: v5e
topology: v5e:2x2
jax: 0.10.0
libtpu: 0.0.40
codegen_flags: <defaults>
</compile_context>

<pallas_src>
from functools import partial

import jax
import jax.numpy as jnp
from jax.experimental import pallas as pl
from jax.experimental.pallas import tpu as pltpu

F = 128  # lane-padded feature width (all true widths here are <= 128)


# --------------------------------------------------------------------------
# Fused Pallas kernel: conv layers + mean aggregation + ReLU + final Linear
# --------------------------------------------------------------------------
def _fused_fae_kernel(x_ref, adj_ref, w1_ref, b1_ref, wu_ref, bu_ref,
                      wlin_ref, blin_ref, out_ref,
                      acc_ref, act_ref, h_ref,
                      *, num_layers, tm, tk):
    l = pl.program_id(0)          # conv-layer index (sequential)
    i = pl.program_id(1)          # output row-tile  (sequential: VMEM scratch deps)
    k = pl.program_id(2)          # aggregation k-tile (reduction axis, last)
    nk = pl.num_programs(2)

    # Stage the layer-0 input into the resident activation scratch exactly once.
    @pl.when((l == 0) & (i == 0) & (k == 0))
    def _():
        act_ref[...] = x_ref[...]

    # New (layer, row-tile): zero the f32 aggregation accumulator.
    @pl.when(k == 0)
    def _():
        acc_ref[...] = jnp.zeros_like(acc_ref)

    k_rows = pl.ds(pl.multiple_of(k * tk, tk), tk)

    # message: h_j = Lin(in, hidden)(x_j).  Computed once per layer (during the
    # i == 0 row sweep) and cached in bf16 VMEM for the remaining row tiles.
    @pl.when(i == 0)
    def _():
        h_ref[k_rows, :] = (
            jnp.dot(act_ref[k_rows, :], w1_ref[...],
                    preferred_element_type=jnp.float32) + b1_ref[...]
        ).astype(jnp.bfloat16)

    # aggregate: mean over incoming edges == row-normalised adjacency matmul.
    # bf16 operands, f32 accumulation on the MXU.
    acc_ref[...] += jnp.dot(adj_ref[...], h_ref[k_rows, :],
                            preferred_element_type=jnp.float32)

    # Row-tile epilogue: update Linear(cat([x_i, aggr_i])) + ReLU, then either
    # stash the activation (hidden conv) or fuse the final Linear (last conv).
    @pl.when(k == nk - 1)
    def _():
        i_rows = pl.ds(pl.multiple_of(i * tm, tm), tm)
        x_i = act_ref[i_rows, :]
        cat = jnp.concatenate([x_i, acc_ref[...]], axis=-1)          # [tm, 256]
        conv = jnp.maximum(
            jnp.dot(cat, wu_ref[...], preferred_element_type=jnp.float32)
            + bu_ref[...],
            0.0)                                                     # torch.relu

        @pl.when(l == num_layers - 1)
        def _():
            # Fused final Lin on the ReLU'd activation; lane-dense [tm,128] store.
            out_ref[...] = (
                jnp.dot(conv, wlin_ref[...], preferred_element_type=jnp.float32)
                + blin_ref[...])

        @pl.when(l < num_layers - 1)
        def _():
            act_ref[i_rows, :] = conv        # stays resident in VMEM (never -> HBM)
            out_ref[...] = conv              # keep buffer defined; overwritten later


# --------------------------------------------------------------------------
# Tiling / VMEM planning
# --------------------------------------------------------------------------
def _round_up(n, m):
    return ((n + m - 1) // m) * m


def _plan_tiles(n):
    # Small graphs: one tile covering the whole (padded) node dimension.
    if n <= 512:
        n_pad = _round_up(n, 128)
        return n_pad, n_pad, n_pad
    # Large graphs: stream the adjacency in (256, 512) tiles (bf16 tile = 256 KiB,
    # double-buffered) -- fits v7x's 64 MiB VMEM and v5e's smaller scoped default.
    tm, tk = 256, 512
    n_pad = _round_up(n, 512)                # divisible by both tm and tk
    return n_pad, tm, tk


def _vmem_limit_bytes(n_pad, tm, tk, num_layers):
    est = (2 * n_pad * F * 4                 # resident x input (worst case 2 bufs)
           + n_pad * F * 4                   # activation scratch (f32)
           + n_pad * F * 2                   # message cache scratch (bf16)
           + tm * F * 4                      # aggregation accumulator
           + 2 * tm * tk * 2                 # adj tiles (bf16, double-buffered)
           + 2 * tm * F * 4                  # output tiles (double-buffered)
           + 2 * (F * F + 2 * F * F + 2 * F) * 4   # per-layer weight buffers
           + 2 * (F * F + F) * 4)                  # final Linear
    return int(min(max(int(est * 1.25), 32 * 1024 * 1024), 48 * 1024 * 1024))


# --------------------------------------------------------------------------
# Parameters (deterministic, synthetic) + packing into lane-padded slabs
# --------------------------------------------------------------------------
def _glorot(key, shape):
    fan_in, fan_out = shape
    lim = jnp.sqrt(6.0 / (fan_in + fan_out))
    return jax.random.uniform(key, shape, jnp.float32, -lim, lim)


def _make_conv_params(key, in_c, hidden, out_c):
    k1, k2, k3, k4 = jax.random.split(key, 4)
    return {"w1": _glorot(k1, (in_c, hidden)),
            "b1": 0.1 * jax.random.normal(k3, (hidden,), jnp.float32),
            "wu": _glorot(k2, (in_c + hidden, out_c)),
            "bu": 0.1 * jax.random.normal(k4, (out_c,), jnp.float32),
            "in_c": in_c, "hidden": hidden, "out_c": out_c}


def _make_linear_params(key, in_c, out_c):
    kw, kb = jax.random.split(key)
    return {"w": _glorot(kw, (in_c, out_c)),
            "b": 0.1 * jax.random.normal(kb, (out_c,), jnp.float32)}


def _pack_params(conv_params, lin_params):
    nl = len(conv_params)
    w1 = jnp.zeros((nl, F, F), jnp.float32)
    b1 = jnp.zeros((nl, 1, F), jnp.float32)
    wu = jnp.zeros((nl, 2 * F, F), jnp.float32)
    bu = jnp.zeros((nl, 1, F), jnp.float32)
    for l, p in enumerate(conv_params):
        ic, hc, oc = p["in_c"], p["hidden"], p["out_c"]
        w1 = w1.at[l, :ic, :hc].set(p["w1"])
        b1 = b1.at[l, 0, :hc].set(p["b1"])
        wu = wu.at[l, :ic, :oc].set(p["wu"][:ic])         # rows acting on x_i
        wu = wu.at[l, F:F + hc, :oc].set(p["wu"][ic:])    # rows acting on aggr_i
        bu = bu.at[l, 0, :oc].set(p["bu"])
    li, lo = lin_params["w"].shape
    wlin = jnp.zeros((F, F), jnp.float32).at[:li, :lo].set(lin_params["w"])
    blin = jnp.zeros((1, F), jnp.float32).at[0, :lo].set(lin_params["b"])
    return w1, b1, wu, bu, wlin, blin


# --------------------------------------------------------------------------
# Graph preprocessing + forward wrapper
# --------------------------------------------------------------------------
def build_mean_adj(edge_index, num_nodes):
    """Dense row-normalised adjacency (bf16) for scatter-'mean' aggregation."""
    src, dst = edge_index[0], edge_index[1]          # messages flow src -> dst
    a = jnp.zeros((num_nodes, num_nodes), jnp.float32)
    a = a.at[dst, src].add(1.0)
    deg = a.sum(axis=1, keepdims=True)
    return (a / jnp.maximum(deg, 1.0)).astype(jnp.bfloat16)   # isolated nodes -> 0


def fae_featgraphconv_forward(x, adj_bf16, conv_params, lin_params):
    n, in_c = x.shape
    num_layers = len(conv_params)
    out_features = lin_params["w"].shape[1]
    n_pad, tm, tk = _plan_tiles(n)

    x_pad = jnp.zeros((n_pad, F), jnp.float32).at[:n, :in_c].set(x)
    adj_pad = jnp.zeros((n_pad, n_pad), jnp.bfloat16).at[:n, :n].set(adj_bf16)
    w1, b1, wu, bu, wlin, blin = _pack_params(conv_params, lin_params)

    grid = (num_layers, n_pad // tm, n_pad // tk)
    flops = (num_layers * (2 * n_pad * n_pad * F          # aggregation (dominant)
                           + 2 * n_pad * F * F            # message Lin
                           + 2 * n_pad * 2 * F * F)       # update Lin
             + 2 * n_pad * F * F)                         # final Lin
    bytes_accessed = (num_layers * n_pad * n_pad * 2      # bf16 adj per layer pass
                      + 2 * n_pad * F * 4                 # x in + out slab
                      + (num_layers * (F * F + 2 * F * F + 2 * F) + F * F + F) * 4)

    out_pad = pl.pallas_call(
        partial(_fused_fae_kernel, num_layers=num_layers, tm=tm, tk=tk),
        out_shape=jax.ShapeDtypeStruct((n_pad, F), jnp.float32),
        grid_spec=pltpu.PrefetchScalarGridSpec(
            num_scalar_prefetch=0,
            grid=grid,
            in_specs=[
                pl.BlockSpec((n_pad, F), lambda l, i, k: (0, 0)),            # x (resident)
                pl.BlockSpec((tm, tk), lambda l, i, k: (i, k)),              # adj tiles
                pl.BlockSpec((None, F, F), lambda l, i, k: (l, 0, 0)),       # W1[l]
                pl.BlockSpec((None, 1, F), lambda l, i, k: (l, 0, 0)),       # b1[l]
                pl.BlockSpec((None, 2 * F, F), lambda l, i, k: (l, 0, 0)),   # Wupd[l]
                pl.BlockSpec((None, 1, F), lambda l, i, k: (l, 0, 0)),       # bupd[l]
                pl.BlockSpec((F, F), lambda l, i, k: (0, 0)),                # W_lin
                pl.BlockSpec((1, F), lambda l, i, k: (0, 0)),                # b_lin
            ],
            out_specs=pl.BlockSpec((tm, F), lambda l, i, k: (i, 0)),
            scratch_shapes=[
                pltpu.VMEM((tm, F), jnp.float32),        # aggregation accumulator
                pltpu.VMEM((n_pad, F), jnp.float32),     # layer-input activations
                pltpu.VMEM((n_pad, F), jnp.bfloat16),    # cached message features
            ]),
        compiler_params=pltpu.CompilerParams(
            # NOTE: the row-tile axis is NOT 'parallel': layer l+1 reads the
            # VMEM-resident activations written by every row tile of layer l,
            # and the message cache is filled during the i == 0 sweep.
            dimension_semantics=("arbitrary", "arbitrary", "arbitrary"),
            vmem_limit_bytes=_vmem_limit_bytes(n_pad, tm, tk, num_layers)),
        cost_estimate=pl.CostEstimate(flops=flops, transcendentals=0,
                                      bytes_accessed=bytes_accessed),
    )(x_pad, adj_pad, w1, b1, wu, bu, wlin, blin)

    return out_pad[:n, :out_features]


# --------------------------------------------------------------------------
# Pure-JAX reference (same numerics: bf16 adjacency, f32 accumulation)
# --------------------------------------------------------------------------
def reference_forward(x, adj_bf16, conv_params, lin_params):
    h_in = x
    for p in conv_params:
        msg = h_in @ p["w1"] + p["b1"]
        aggr = jnp.dot(adj_bf16, msg.astype(jnp.bfloat16),
                       preferred_element_type=jnp.float32)
        cat = jnp.concatenate([h_in, aggr], axis=-1)
        h_in = jnp.maximum(cat @ p["wu"] + p["bu"], 0.0)
    return h_in @ lin_params["w"] + lin_params["b"]


# --------------------------------------------------------------------------
if __name__ == "__main__":
    key = jax.random.PRNGKey(0)
    kx, kg1, kg2 = jax.random.split(key, 3)

    num_nodes, in_channels = 64, 4
    x = jax.random.normal(kx, (num_nodes, in_channels), jnp.float32)

    # deterministic ring graph: each node i -> i±1, i±2  (E = 4N)
    idx = jnp.arange(num_nodes)
    src = jnp.concatenate([idx, idx, idx, idx])
    dst = jnp.concatenate([(idx + 1) % num_nodes, (idx - 1) % num_nodes,
                           (idx + 2) % num_nodes, (idx - 2) % num_nodes])
    edge_index = jnp.stack([src, dst]).astype(jnp.int32)
    adj = build_mean_adj(edge_index, num_nodes)

    # --- 'Prediction' branch: conv(in,64,64) -> conv(64,32,32) -> Lin(32,1)
    kc1, kc2, kl = jax.random.split(kg1, 3)
    conv_pred = [_make_conv_params(kc1, in_channels, 64, 64),
                 _make_conv_params(kc2, 64, 32, 32)]
    lin_pred = _make_linear_params(kl, 32, 1)
    out_pred = jax.block_until_ready(
        fae_featgraphconv_forward(x, adj, conv_pred, lin_pred))
    ref_pred = reference_forward(x, adj, conv_pred, lin_pred)
    assert out_pred.shape == (num_nodes, 1)
    assert jnp.allclose(out_pred, ref_pred, rtol=5e-2, atol=5e-2)

    # --- autoencoder branch: conv(in,64,32) -> Lin(32,in)
    kc1b, klb = jax.random.split(kg2)
    conv_ae = [_make_conv_params(kc1b, in_channels, 64, 32)]
    lin_ae = _make_linear_params(klb, 32, in_channels)
    out_ae = jax.block_until_ready(
        fae_featgraphconv_forward(x, adj, conv_ae, lin_ae))
    ref_ae = reference_forward(x, adj, conv_ae, lin_ae)
    assert out_ae.shape == (num_nodes, in_channels)
    assert jnp.allclose(out_ae, ref_ae, rtol=5e-2, atol=5e-2)

    assert bool(jnp.isfinite(out_pred).all()) and bool(jnp.isfinite(out_ae).all())
    print("KERNEL_OK")
</pallas_src>

<mosaic_0001>
module attributes {stable_mosaic.version = 11 : i64} {
  func.func @_fused_fae_kernel(%arg0: i32, %arg1: i32, %arg2: i32, %arg3: memref<128x128xf32, #tpu.memory_space<vmem>>, %arg4: memref<128x128xbf16, #tpu.memory_space<vmem>>, %arg5: memref<1x128x128xf32, #tpu.memory_space<vmem>>, %arg6: memref<1x1x128xf32, #tpu.memory_space<vmem>>, %arg7: memref<1x256x128xf32, #tpu.memory_space<vmem>>, %arg8: memref<1x1x128xf32, #tpu.memory_space<vmem>>, %arg9: memref<128x128xf32, #tpu.memory_space<vmem>>, %arg10: memref<1x128xf32, #tpu.memory_space<vmem>>, %arg11: memref<128x128xf32, #tpu.memory_space<vmem>>, %arg12: memref<128x128xf32, #tpu.memory_space<vmem>>, %arg13: memref<128x128xf32, #tpu.memory_space<vmem>>, %arg14: memref<128x128xbf16, #tpu.memory_space<vmem>>) attributes {dimension_semantics = [#tpu.dimension_semantics<arbitrary>, #tpu.dimension_semantics<arbitrary>, #tpu.dimension_semantics<arbitrary>], iteration_bounds = array<i64: 2, 1, 1>, scalar_prefetch = 0 : i64, scratch_operands = 3 : i64, tpu.core_type = #tpu.core_type<tc>, window_params = [{pipeline_mode = #tpu.pipeline_mode<synchronous>, transform_indices = @transform_0, window_bounds = array<i64: 128, 128>}, {transform_indices = @transform_1, window_bounds = array<i64: 128, 128>}, {transform_indices = @transform_2, window_bounds = array<i64: 1, 128, 128>}, {transform_indices = @transform_3, window_bounds = array<i64: 1, 1, 128>}, {transform_indices = @transform_4, window_bounds = array<i64: 1, 256, 128>}, {transform_indices = @transform_5, window_bounds = array<i64: 1, 1, 128>}, {pipeline_mode = #tpu.pipeline_mode<synchronous>, transform_indices = @transform_6, window_bounds = array<i64: 128, 128>}, {pipeline_mode = #tpu.pipeline_mode<synchronous>, transform_indices = @transform_7, window_bounds = array<i64: 1, 128>}, {transform_indices = @transform_8, window_bounds = array<i64: 128, 128>}]} {
    %c0_i32 = arith.constant 0 : i32
    %0 = arith.cmpi eq, %arg0, %c0_i32 : i32
    %c0_i32_0 = arith.constant 0 : i32
    %1 = arith.cmpi eq, %arg1, %c0_i32_0 : i32
    %2 = arith.andi %0, %1 : i1
    %c0_i32_1 = arith.constant 0 : i32
    %3 = arith.cmpi eq, %arg2, %c0_i32_1 : i32
    %4 = arith.andi %2, %3 : i1
    %5 = arith.extui %4 : i1 to i32
    %c0_i32_2 = arith.constant 0 : i32
    %6 = arith.cmpi ne, %5, %c0_i32_2 : i32
    scf.if %6 {
      %c0_15 = arith.constant 0 : index
      %c0_16 = arith.constant 0 : index
      %25 = vector.load %arg3[%c0_15, %c0_16] : memref<128x128xf32, #tpu.memory_space<vmem>>, vector<128x128xf32>
      %c0_17 = arith.constant 0 : index
      %c0_18 = arith.constant 0 : index
      %26 = vector.load %arg13[%c0_17, %c0_18] : memref<128x128xf32, #tpu.memory_space<vmem>>, vector<128x128xf32>
      tpu.vector_store %arg13[%c0_17, %c0_18], %25 {strides = array<i32>} : memref<128x128xf32, #tpu.memory_space<vmem>>, vector<128x128xf32>,
    } else {
    }
    %c0_i32_3 = arith.constant 0 : i32
    %7 = arith.cmpi eq, %arg2, %c0_i32_3 : i32
    %8 = arith.extui %7 : i1 to i32
    %c0_i32_4 = arith.constant 0 : i32
    %9 = arith.cmpi ne, %8, %c0_i32_4 : i32
    scf.if %9 {
      %cst_15 = arith.constant 0.000000e+00 : f32
      %25 = vector.broadcast %cst_15 : f32 to vector<128x128xf32>
      %c0_16 = arith.constant 0 : index
      %c0_17 = arith.constant 0 : index
      %26 = vector.load %arg12[%c0_16, %c0_17] : memref<128x128xf32, #tpu.memory_space<vmem>>, vector<128x128xf32>
      tpu.vector_store %arg12[%c0_16, %c0_17], %25 {strides = array<i32>} : memref<128x128xf32, #tpu.memory_space<vmem>>, vector<128x128xf32>,
    } else {
    }
    %c128_i32 = arith.constant 128 : i32
    %10 = arith.muli %arg2, %c128_i32 : i32
    %11 = tpu.assume_multiple %10, 128 : i32
    %c0_i32_5 = arith.constant 0 : i32
    %12 = arith.cmpi eq, %arg1, %c0_i32_5 : i32
    %13 = arith.extui %12 : i1 to i32
    %c0_i32_6 = arith.constant 0 : i32
    %14 = arith.cmpi ne, %13, %c0_i32_6 : i32
    scf.if %14 {
      %25 = arith.index_cast %11 : i32 to index
      %c0_15 = arith.constant 0 : index
      %26 = vector.load %arg13[%25, %c0_15] : memref<128x128xf32, #tpu.memory_space<vmem>>, vector<128x128xf32>
      %c0_16 = arith.constant 0 : index
      %c0_17 = arith.constant 0 : index
      %c0_18 = arith.constant 0 : index
      %27 = vector.load %arg5[%c0_16, %c0_17, %c0_18] : memref<1x128x128xf32, #tpu.memory_space<vmem>>, vector<1x128x128xf32>
      %28 = vector.shape_cast %27 : vector<1x128x128xf32> to vector<128x128xf32>
      %cst_19 = arith.constant dense<0.000000e+00> : vector<128x128xf32>
      %29 = tpu.matmul %26, %28, %cst_19 {dimension_numbers = #tpu.dot_dimension_numbers<[1], [0], [0], [1], [0, 0, 1, 1], [], []>} : vector<128x128xf32>, vector<128x128xf32>, vector<128x128xf32> -> vector<128x128xf32>
      %c0_20 = arith.constant 0 : index
      %c0_21 = arith.constant 0 : index
      %c0_22 = arith.constant 0 : index
      %30 = vector.load %arg6[%c0_20, %c0_21, %c0_22] : memref<1x1x128xf32, #tpu.memory_space<vmem>>, vector<1x1x128xf32>
      %31 = vector.shape_cast %30 : vector<1x1x128xf32> to vector<1x128xf32>
      %32 = vector.broadcast %31 : vector<1x128xf32> to vector<128x128xf32>
      %33 = arith.addf %29, %32 : vector<128x128xf32>
      %34 = arith.truncf %33 : vector<128x128xf32> to vector<128x128xbf16>
      %35 = arith.index_cast %11 : i32 to index
      %c0_23 = arith.constant 0 : index
      %36 = vector.load %arg14[%35, %c0_23] : memref<128x128xbf16, #tpu.memory_space<vmem>>, vector<128x128xbf16>
      tpu.vector_store %arg14[%35, %c0_23], %34 {strides = array<i32>} : memref<128x128xbf16, #tpu.memory_space<vmem>>, vector<128x128xbf16>,
    } else {
    }
    %c0 = arith.constant 0 : index
    %c0_7 = arith.constant 0 : index
    %15 = vector.load %arg12[%c0, %c0_7] : memref<128x128xf32, #tpu.memory_space<vmem>>, vector<128x128xf32>
    %c0_8 = arith.constant 0 : index
    %c0_9 = arith.constant 0 : index
    %16 = vector.load %arg4[%c0_8, %c0_9] : memref<128x128xbf16, #tpu.memory_space<vmem>>, vector<128x128xbf16>
    %17 = arith.index_cast %11 : i32 to index
    %c0_10 = arith.constant 0 : index
    %18 = vector.load %arg14[%17, %c0_10] : memref<128x128xbf16, #tpu.memory_space<vmem>>, vector<128x128xbf16>
    %cst = arith.constant dense<0.000000e+00> : vector<128x128xf32>
    %19 = tpu.matmul %16, %18, %cst {dimension_numbers = #tpu.dot_dimension_numbers<[1], [0], [0], [1], [0, 0, 1, 1], [], []>} : vector<128x128xbf16>, vector<128x128xbf16>, vector<128x128xf32> -> vector<128x128xf32>
    %20 = arith.addf %15, %19 : vector<128x128xf32>
    %c0_11 = arith.constant 0 : index
    %c0_12 = arith.constant 0 : index
    %21 = vector.load %arg12[%c0_11, %c0_12] : memref<128x128xf32, #tpu.memory_space<vmem>>, vector<128x128xf32>
    tpu.vector_store %arg12[%c0_11, %c0_12], %20 {strides = array<i32>} : memref<128x128xf32, #tpu.memory_space<vmem>>, vector<128x128xf32>,
    %c0_i32_13 = arith.constant 0 : i32
    %22 = arith.cmpi eq, %arg2, %c0_i32_13 : i32
    %23 = arith.extui %22 : i1 to i32
    %c0_i32_14 = arith.constant 0 : i32
    %24 = arith.cmpi ne, %23, %c0_i32_14 : i32
    scf.if %24 {
      %c128_i32_15 = arith.constant 128 : i32
      %25 = arith.muli %arg1, %c128_i32_15 : i32
      %26 = tpu.assume_multiple %25, 128 : i32
      %27 = arith.index_cast %26 : i32 to index
      %c0_16 = arith.constant 0 : index
      %28 = vector.load %arg13[%27, %c0_16] : memref<128x128xf32, #tpu.memory_space<vmem>>, vector<128x128xf32>
      %c0_17 = arith.constant 0 : index
      %c0_18 = arith.constant 0 : index
      %29 = vector.load %arg12[%c0_17, %c0_18] : memref<128x128xf32, #tpu.memory_space<vmem>>, vector<128x128xf32>
      %30 = tpu.concatenate %28, %29 in 1 : vector<128x128xf32>, vector<128x128xf32> -> vector<128x256xf32>
      %c0_19 = arith.constant 0 : index
      %c0_20 = arith.constant 0 : index
      %c0_21 = arith.constant 0 : index
      %31 = vector.load %arg7[%c0_19, %c0_20, %c0_21] : memref<1x256x128xf32, #tpu.memory_space<vmem>>, vector<1x256x128xf32>
      %32 = vector.shape_cast %31 : vector<1x256x128xf32> to vector<256x128xf32>
      %cst_22 = arith.constant dense<0.000000e+00> : vector<128x128xf32>
      %33 = tpu.matmul %30, %32, %cst_22 {dimension_numbers = #tpu.dot_dimension_numbers<[1], [0], [0], [1], [0, 0, 1, 1], [], []>} : vector<128x256xf32>, vector<256x128xf32>, vector<128x128xf32> -> vector<128x128xf32>
      %c0_23 = arith.constant 0 : index
      %c0_24 = arith.constant 0 : index
      %c0_25 = arith.constant 0 : index
      %34 = vector.load %arg8[%c0_23, %c0_24, %c0_25] : memref<1x1x128xf32, #tpu.memory_space<vmem>>, vector<1x1x128xf32>
      %35 = vector.shape_cast %34 : vector<1x1x128xf32> to vector<1x128xf32>
      %36 = vector.broadcast %35 : vector<1x128xf32> to vector<128x128xf32>
      %37 = arith.addf %33, %36 : vector<128x128xf32>
      %cst_26 = arith.constant 0.000000e+00 : f32
      %38 = vector.broadcast %cst_26 : f32 to vector<128x128xf32>
      %39 = arith.maximumf %37, %38 : vector<128x128xf32>
      %c1_i32 = arith.constant 1 : i32
      %40 = arith.cmpi eq, %arg0, %c1_i32 : i32
      %41 = arith.extui %40 : i1 to i32
      %c0_i32_27 = arith.constant 0 : i32
      %42 = arith.cmpi ne, %41, %c0_i32_27 : i32
      scf.if %42 {
        %c0_30 = arith.constant 0 : index
        %c0_31 = arith.constant 0 : index
        %46 = vector.load %arg9[%c0_30, %c0_31] : memref<128x128xf32, #tpu.memory_space<vmem>>, vector<128x128xf32>
        %cst_32 = arith.constant dense<0.000000e+00> : vector<128x128xf32>
        %47 = tpu.matmul %39, %46, %cst_32 {dimension_numbers = #tpu.dot_dimension_numbers<[1], [0], [0], [1], [0, 0, 1, 1], [], []>} : vector<128x128xf32>, vector<128x128xf32>, vector<128x128xf32> -> vector<128x128xf32>
        %c0_33 = arith.constant 0 : index
        %c0_34 = arith.constant 0 : index
        %48 = vector.load %arg10[%c0_33, %c0_34] : memref<1x128xf32, #tpu.memory_space<vmem>>, vector<1x128xf32>
        %49 = vector.broadcast %48 : vector<1x128xf32> to vector<128x128xf32>
        %50 = arith.addf %47, %49 : vector<128x128xf32>
        %c0_35 = arith.constant 0 : index
        %c0_36 = arith.constant 0 : index
        %51 = vector.load %arg11[%c0_35, %c0_36] : memref<128x128xf32, #tpu.memory_space<vmem>>, vector<128x128xf32>
        tpu.vector_store %arg11[%c0_35, %c0_36], %50 {strides = array<i32>} : memref<128x128xf32, #tpu.memory_space<vmem>>, vector<128x128xf32>,
      } else {
      }
      %c1_i32_28 = arith.constant 1 : i32
      %43 = arith.cmpi slt, %arg0, %c1_i32_28 : i32
      %44 = arith.extui %43 : i1 to i32
      %c0_i32_29 = arith.constant 0 : i32
      %45 = arith.cmpi ne, %44, %c0_i32_29 : i32
      scf.if %45 {
        %46 = arith.index_cast %26 : i32 to index
        %c0_30 = arith.constant 0 : index
        %47 = vector.load %arg13[%46, %c0_30] : memref<128x128xf32, #tpu.memory_space<vmem>>, vector<128x128xf32>
        tpu.vector_store %arg13[%46, %c0_30], %39 {strides = array<i32>} : memref<128x128xf32, #tpu.memory_space<vmem>>, vector<128x128xf32>,
        %c0_31 = arith.constant 0 : index
        %c0_32 = arith.constant 0 : index
        %48 = vector.load %arg11[%c0_31, %c0_32] : memref<128x128xf32, #tpu.memory_space<vmem>>, vector<128x128xf32>
        tpu.vector_store %arg11[%c0_31, %c0_32], %39 {strides = array<i32>} : memref<128x128xf32, #tpu.memory_space<vmem>>, vector<128x128xf32>,
      } else {
      }
    } else {
    }
    return
  }
  func.func @transform_0(%arg0: i32, %arg1: i32, %arg2: i32) -> (i32, i32) {
    %c0_i32 = arith.constant 0 : i32
    %c0_i32_0 = arith.constant 0 : i32
    %c0_i32_1 = arith.constant 0 : i32
    return %c0_i32, %c0_i32_0 : i32, i32
  }
  func.func @transform_1(%arg0: i32, %arg1: i32, %arg2: i32) -> (i32, i32) {
    %c0_i32 = arith.constant 0 : i32
    return %arg1, %arg2 : i32, i32
  }
  func.func @transform_2(%arg0: i32, %arg1: i32, %arg2: i32) -> (i32, i32, i32) {
    %c0_i32 = arith.constant 0 : i32
    %c0_i32_0 = arith.constant 0 : i32
    %c0_i32_1 = arith.constant 0 : i32
    return %arg0, %c0_i32, %c0_i32_0 : i32, i32, i32
  }
  func.func @transform_3(%arg0: i32, %arg1: i32, %arg2: i32) -> (i32, i32, i32) {
    %c0_i32 = arith.constant 0 : i32
    %c0_i32_0 = arith.constant 0 : i32
    %c0_i32_1 = arith.constant 0 : i32
    return %arg0, %c0_i32, %c0_i32_0 : i32, i32, i32
  }
  func.func @transform_4(%arg0: i32, %arg1: i32, %arg2: i32) -> (i32, i32, i32) {
    %c0_i32 = arith.constant 0 : i32
    %c0_i32_0 = arith.constant 0 : i32
    %c0_i32_1 = arith.constant 0 : i32
    return %arg0, %c0_i32, %c0_i32_0 : i32, i32, i32
  }
  func.func @transform_5(%arg0: i32, %arg1: i32, %arg2: i32) -> (i32, i32, i32) {
    %c0_i32 = arith.constant 0 : i32
    %c0_i32_0 = arith.constant 0 : i32
    %c0_i32_1 = arith.constant 0 : i32
    return %arg0, %c0_i32, %c0_i32_0 : i32, i32, i32
  }
  func.func @transform_6(%arg0: i32, %arg1: i32, %arg2: i32) -> (i32, i32) {
    %c0_i32 = arith.constant 0 : i32
    %c0_i32_0 = arith.constant 0 : i32
    %c0_i32_1 = arith.constant 0 : i32
    return %c0_i32, %c0_i32_0 : i32, i32
  }
  func.func @transform_7(%arg0: i32, %arg1: i32, %arg2: i32) -> (i32, i32) {
    %c0_i32 = arith.constant 0 : i32
    %c0_i32_0 = arith.constant 0 : i32
    %c0_i32_1 = arith.constant 0 : i32
    return %c0_i32, %c0_i32_0 : i32, i32
  }
  func.func @transform_8(%arg0: i32, %arg1: i32, %arg2: i32) -> (i32, i32) {
    %c0_i32 = arith.constant 0 : i32
    %c0_i32_0 = arith.constant 0 : i32
    return %arg1, %c0_i32 : i32, i32
  }
}

</mosaic_0001>

<bundles_post_ra>
// kernel: tpu_custom_call.1
= control target key start
LH: loop header
LB: loop body
LE: loop exit
PB: predicated region body
PF: predicated region fallthrough
CT: control target
= control target key end

     0   :  { %s2428_s0 = inlined_call_operand.hbm [shape: f32[128,128], index: 0, kind: input, shape index: {}]   ;;  %s2429_s1 = inlined_call_operand.hbm [shape: bf16[128,128], index: 1, kind: input, shape index: {}]   ;;  %s2430_s2 = inlined_call_operand.hbm [shape: f32[2,128,128], index: 2, kind: input, shape index: {}]   ;;  %s2431_s3 = inlined_call_operand.vmem [shape: f32[2,1,128], index: 3, kind: input, shape index: {}]   ;;  %s2432_s4 = inlined_call_operand.hbm [shape: f32[2,256,128], index: 4, kind: input, shape index: {}]   ;;  %s2433_s5 = inlined_call_operand.vmem [shape: f32[2,1,128], index: 5, kind: input, shape index: {}]   ;;  %s2434_s6 = inlined_call_operand.hbm [shape: f32[128,128], index: 6, kind: input, shape index: {}]   ;;  %s2435_s7 = inlined_call_operand.vmem [shape: f32[1,128], index: 7, kind: input, shape index: {}]   ;;  %s2436_s8 = inlined_call_operand.hbm [shape: f32[128,128], index: 8, kind: output, shape index: {}]  }
   0x1   :  { %2442 = sst [smem:[#allocation21_spill]] %s2428_s0 }
   0x2   :  { %2443 = sst [smem:[#allocation22_spill]] %s2429_s1 }
   0x3   :  { %2444 = sst [smem:[#allocation23_spill]] %s2430_s2 }
   0x4   :  { %2445 = sst [smem:[#allocation24_spill]] %s2434_s6 }
   0x5   :  { %13 = vsyncpa [#allocation6], 0 }
   0x6   :  { %14 = vsyncpa [#allocation9], 0 }
   0x7   :  { %15 = vsyncpa [#allocation7], 0  ;;  %s2025_s27 = smov 0   ;;  %s2027_s28 = smov 0  }
   0x8   :  { %s2029_s29 = smov 0   ;;  %s2031_s30 = smov 0  }
   0x9   :  { %s2033_s9 = smov 0   ;;  %s2035_s10 = smov 0  }
   0xa LB: > { %s2054_s11 = sadd.s32 4294967295, %s1968_s10   ;;  %p109_p0 = scmp.ne.s32.totalorder %s1952_s28, %s1948_s27  ;;  %s1968_s10 = sphi %s2035_s10, %s21_s10   ;;  %s1964_s9 = sphi %s2033_s9, %s2465_s9   ;;  %s1960_s30 = sphi %s2031_s30, %s2464_s30   ;;  %s1956_s29 = sphi %s2029_s29, %s2463_s29   ;;  %s1952_s28 = sphi %s2027_s28, %s2462_s28   ;;  %s1948_s27 = sphi %s2025_s27, %s2461_s27  }
   0xb   : > { %p110_p1 = scmp.eq.s32.totalorder %s2054_s11, 0  ;;  %p1413_p2 = scmp.ge.s32.totalorder %s1968_s10, 1 }
   0xc   : > { %p266_p3 = scmp.lt.s32.totalorder %s1968_s10, 3  ;;  %s2447_s0 = sld [smem:[#allocation21_spill]] }
   0xd   : > { %p2062_p4 = por %p110_p1, %p109_p0  ;;  %s1970_s17 = smov [#allocation5]  }
   0xe   : > { %p2069_p5 = pnand %p1413_p2, %p266_p3  ;;  %s279_s18 = sshll.u32 %s1970_s17, 4  ;;  %s280_s18 = int_to_ptr.vmem [resolvable:$true] %s279_s18 }
   0xf   : > { %s2450_s1 = sld [smem:[#allocation22_spill]]  ;;  %s2437_s23 = smov 128  }
  0x10   : > { %p1637_p6 = pneg %p2069_p5  ;;  %s2439_s24 = smov 8  }
  0x11   : > { %s1973_s25 = smov [#allocation8]   ;;  %s1974_s27 = smov 64  }
  0x12   : > { %s277_s15 = sshll.u32 %s2447_s0, 4  ;;  %p2077_p7 = pnand %p1637_p6, %p110_p1  ;;  %s278_s15 = int_to_ptr.hbm [resolvable:$true] %s277_s15 }
  0x13   : > { %s297_s26 = sshll.u32 %s1973_s25, 4  ;;  %s1975_s13 = smov 4   ;;  %s298_s26 = int_to_ptr.vmem [resolvable:$true] %s297_s26 }
  0x14   : > { %1640 = dma.hbm_to_vmem [thread:$0]  (!%p2077_p7), %s278_s15, 2048, %s280_s18, [#allocation6], %s2437_s23, %s2437_s23, %s2439_s24  }
  0x15   : > { %s295_s22 = sshll.u32 %s2450_s1, 4  ;;  %s40_s14 = sadd.s32 1, %s1964_s9  ;;  %s296_s22 = int_to_ptr.hbm [resolvable:$true] %s295_s22 }
  0x16   : > { %1643 = dma.hbm_to_vmem [thread:$0]  (!%p2077_p7), %s296_s22, 1024, %s298_s26, [#allocation9], %s1974_s27, %s1974_s27, %s1975_s13  }
  0x17   : > { %s96_s17 = sadd.s32 1, %s1956_s29  ;;  %p42_p8 = scmp.ge.s32.totalorder %s40_s14, 2 }
  0x18   : > { %p103_p9 = scmp.ne.s32.totalorder %s1956_s29, %s1952_s28  ;;  %p104_p10 = scmp.eq.s32.totalorder %s1968_s10, 0 }
  0x19   : > { %p1657_p11 = scmp.lt.s32.totalorder %s1968_s10, 2  ;;  %s2467_s14 = smov (%p42_p8, %s40_s14), 0 }
  0x1a   : > { %2451 = sst [smem:[#allocation19_spill]] %s2467_s14  ;;  %p2099_p12 = por %p104_p10, %p103_p9 }
  0x1b   : > { %s328_s18 = sand.u32 1, %s1968_s10   ;;  %s93_s20 = ssub.s32 %s1964_s9, %s2467_s14 }
  0x1c   : > { %p94_p13 = scmp.eq.s32.totalorder %s93_s20, 0  ;;  %s330_s21 = sand.u32 1, %s1956_s29  }
  0x1d   : > { %s1418_s22 = sshll.u32 %s330_s21, 7  ;;  %s1502_s25 = sshll.u32 %s1964_s9, 7 }
  0x1e   : > { %s2109_s26 = scalar_select %p94_p13, %s1956_s29, %s96_s17  }
  0x1f   : > { %s2454_s2 = sld [smem:[#allocation23_spill]]  ;;  %s332_s0 = scalar_lea.vmem [#allocation10], %s1418_s22 }
  0x20   : > { %2453 = sst [smem:[#allocation20_spill]] %s2109_s26  ;;  %s340_s1 = sshll.u32 %s332_s0, 4  ;;  %s341_s1 = int_to_ptr.vmem [resolvable:$true] %s340_s1 }
  0x21   : > { %p2118_p0 = pnand %p1657_p11, %p2099_p12  ;;  %s2456_s6 = sld [smem:[#allocation24_spill]] }
  0x22   : > { %s2457_s0 = smov 8   ;;  %s2458_s22 = smov 128  }
  0x23   : > { %s1421_s15 = sshll.u32 %s330_s21, 8  ;;  %s1503_s14 = sshll.u32 %s1964_s9, 8 }
  0x25   : > { %s337_s23 = scalar_lea.hbm %s2454_s2, %s1502_s25  ;;  %s1976_s25 = smov [#allocation12]  }
  0x26   : > { %s338_s24 = sshll.u32 %s337_s23, 4  ;;  %s311_s27 = sshll.u32 %s1976_s25, 4  ;;  %s339_s24 = int_to_ptr.hbm [resolvable:$true] %s338_s24  ;;  %s312_s27 = int_to_ptr.vmem [resolvable:$true] %s311_s27 }
  0x27   : > { %s309_s26 = sshll.u32 %s2456_s6, 4  ;;  %s329_s23 = scalar_lea.sflag [#allocation6], %s328_s18  ;;  %s310_s26 = int_to_ptr.hbm [resolvable:$true] %s309_s26 }
  0x28   : > { %1650 = dma.hbm_to_vmem [thread:$0]  (!%p2118_p0), %s339_s24, 2048, %s341_s1, %s329_s23, %s2458_s22, %s2458_s22, %s2457_s0  }
  0x29   : > { %1646 = dma.hbm_to_vmem [thread:$0]  (!%p2077_p7), %s310_s26, 2048, %s312_s27, [#allocation9], %s2458_s22, %s2458_s22, %s2457_s0  }
  0x2a   : > { %s365_s2 = scalar_lea.hbm %s2432_s4, %s1503_s14  ;;  %s360_s6 = scalar_lea.vmem [#allocation11], %s1421_s15 }
  0x2b   : > { %s368_s25 = sshll.u32 %s360_s6, 4  ;;  %s366_s18 = sshll.u32 %s365_s2, 4  ;;  %s369_s25 = int_to_ptr.vmem [resolvable:$true] %s368_s25  ;;  %s367_s18 = int_to_ptr.hbm [resolvable:$true] %s366_s18 }
  0x2c   : > { %1653 = dma.hbm_to_vmem [thread:$0]  (!%p2118_p0), %s367_s18, 4096, %s369_s25, %s329_s23, %s2458_s22, %s2458_s22, %s2457_s0  }
  0x2d   : > { %386 = sbr.rel (%p2069_p5) target bundleno = 1017 (0x3f9), region = 52 }
  0x32   : > { %1927 = dma.done.wait (%p110_p1), [#allocation6], 2048  }
  0x33   : > { %1929 = vsyncadd (%p110_p1), [#allocation6], 4294965248 }
  0x34   : > { %1931 = dma.done.wait (%p110_p1), [#allocation9], 1024  }
  0x35   : > { %1933 = vsyncadd (%p110_p1), [#allocation9], 4294966272  ;;  %s398_s1 = sand.u32 1, %s2054_s11   ;;  %s400_s2 = sand.u32 1, %s1952_s28  }
  0x36   : > { %s1427_s6 = sshll.u32 %s400_s2, 7  ;;  %s399_s16 = scalar_lea.sflag [#allocation6], %s398_s1 }
  0x37   : > { %s2156_s19 = scalar_lea.vmem [#allocation10], %s1427_s6 }
  0x38   : > { %1935 = dma.done.wait (%p2062_p4), %s399_s16, 6144  }
  0x39   : > { %1937 = vsyncadd (%p2062_p4), %s399_s16, 4294961152  ;;  %s1428_s24 = sshll.u32 %s400_s2, 8 }
  0x3a   : > { %s2162_s21 = scalar_lea.vmem [#allocation11], %s1428_s24 }
  0x3b   : > { %1939 = dma.done.wait (%p110_p1), [#allocation9], 2048  }
  0x3c   : > { %1941 = vsyncadd (%p110_p1), [#allocation9], 4294965248  ;;  %p458_p2 = scmp.lt.s32.totalorder %s1960_s30, 1  ;;  %p465_p3 = scmp.eq.s32.totalorder %s1960_s30, 0 }
  0x3d   : > { %v474_v0 = vld [vmem:[#allocation5] sm:$0xff] (%p465_p3)  ;;  %v475_v1 = vld [vmem:[#allocation5 + $0x8] sm:$0xff] (%p465_p3)  ;;  %v476_v2 = vld [vmem:[#allocation5 + $0x10] sm:$0xff] (%p465_p3) }
  0x3e   : > { %s2171_s26 = scalar_select %p458_p2, %s1960_s30, 1  ;;  %490 = vst [vmem:[#allocation3 + $0x30] sm:$0xff] (%p465_p3), %v474_v0  ;;  %v477_v3 = vld [vmem:[#allocation5 + $0x18] sm:$0xff] (%p465_p3)  ;;  %v478_v4 = vld [vmem:[#allocation5 + $0x20] sm:$0xff] (%p465_p3)  ;;  %v479_v5 = vld [vmem:[#allocation5 + $0x28] sm:$0xff] (%p465_p3) }
  0x3f   : > { %473 = sbr.rel (!%p465_p3) target bundleno = 78 (0x4e), region = 76  ;;  %491 = vst [vmem:[#allocation3] sm:$0xff] (%p465_p3), %v475_v1  ;;  %v480_v6 = vld [vmem:[#allocation5 + $0x30] sm:$0xff] (%p465_p3)  ;;  %v481_v7 = vld [vmem:[#allocation5 + $0x38] sm:$0xff] (%p465_p3)  ;;  %v482_v8 = vld [vmem:[#allocation5 + $0x40] sm:$0xff] (%p465_p3) }
  0x40   : > { %s460_s27 = scalar_lea.vmem %s2431_s3, %s2171_s26  ;;  %s463_s22 = scalar_lea.vmem %s2433_s5, %s2171_s26  ;;  %492 = vst [vmem:[#allocation3 + $0x58] sm:$0xff] (%p465_p3), %v476_v2  ;;  %v483_v9 = vld [vmem:[#allocation5 + $0x48] sm:$0xff] (%p465_p3)  ;;  %v484_v10 = vld [vmem:[#allocation5 + $0x50] sm:$0xff] (%p465_p3)  ;;  %v485_v11 = vld [vmem:[#allocation5 + $0x58] sm:$0xff] (%p465_p3) }
  0x41   : > { %493 = vst [vmem:[#allocation3 + $0x18] sm:$0xff] (%p465_p3), %v477_v3  ;;  %v486_v12 = vld [vmem:[#allocation5 + $0x60] sm:$0xff] (%p465_p3)  ;;  %v487_v13 = vld [vmem:[#allocation5 + $0x68] sm:$0xff] (%p465_p3)  ;;  %v488_v14 = vld [vmem:[#allocation5 + $0x70] sm:$0xff] (%p465_p3) }
  0x42   : > { %494 = vst [vmem:[#allocation3 + $0x50] sm:$0xff] (%p465_p3), %v478_v4  ;;  %v489_v15 = vld [vmem:[#allocation5 + $0x78] sm:$0xff] (%p465_p3) }
  0x43   : > { %495 = vst [vmem:[#allocation3 + $0x68] sm:$0xff] (%p465_p3), %v479_v5 }
  0x44   : > { %496 = vst [vmem:[#allocation3 + $0x8] sm:$0xff] %v480_v6 }
  0x45   : > { %497 = vst [vmem:[#allocation3 + $0x48] sm:$0xff] %v481_v7 }
  0x46   : > { %498 = vst [vmem:[#allocation3 + $0x40] sm:$0xff] %v482_v8 }
  0x47   : > { %499 = vst [vmem:[#allocation3 + $0x20] sm:$0xff] %v483_v9 }
  0x48   : > { %500 = vst [vmem:[#allocation3 + $0x10] sm:$0xff] %v484_v10 }
  0x49   : > { %501 = vst [vmem:[#allocation3 + $0x38] sm:$0xff] %v485_v11 }
  0x4a   : > { %502 = vst [vmem:[#allocation3 + $0x60] sm:$0xff] %v486_v12 }
  0x4b   : > { %503 = vst [vmem:[#allocation3 + $0x70] sm:$0xff] %v487_v13 }
  0x4c   : > { %504 = vst [vmem:[#allocation3 + $0x78] sm:$0xff] %v488_v14 }
  0x4d   : > { %505 = vst [vmem:[#allocation3 + $0x28] sm:$0xff] %v489_v15 }
  0x4e PF: > { %v561_v16 = vld [vmem:[%s2156_s19 + $0x78] sm:$0xff]  ;;  %v560_v17 = vld [vmem:[%s2156_s19 + $0x70] sm:$0xff]  ;;  %v559_v18 = vld [vmem:[%s2156_s19 + $0x68] sm:$0xff]  ;;  %p1496_p1 = scmp.ne.s32.totalorder %s1960_s30, 1 }
  0x4f   : > { %566 = vmatpush.msra.mxu0 %v561_v16  ;;  %v558_v19 = vld [vmem:[%s2156_s19 + $0x60] sm:$0xff]  ;;  %v557_v20 = vld [vmem:[%s2156_s19 + $0x58] sm:$0xff]  ;;  %v556_v21 = vld [vmem:[%s2156_s19 + $0x50] sm:$0xff] }
  0x50   : > { %v555_v22 = vld [vmem:[%s2156_s19 + $0x48] sm:$0xff]  ;;  %v554_v23 = vld [vmem:[%s2156_s19 + $0x40] sm:$0xff]  ;;  %v553_v24 = vld [vmem:[%s2156_s19 + $0x38] sm:$0xff] }
  0x51   : > { %567 = vmatpush.msra.mxu0 %v560_v17  ;;  %v552_v25 = vld [vmem:[%s2156_s19 + $0x30] sm:$0xff]  ;;  %v551_v26 = vld [vmem:[%s2156_s19 + $0x28] sm:$0xff]  ;;  %v550_v27 = vld [vmem:[%s2156_s19 + $0x20] sm:$0xff] }
  0x52   : > { %v549_v28 = vld [vmem:[%s2156_s19 + $0x18] sm:$0xff]  ;;  %v548_v29 = vld [vmem:[%s2156_s19 + $0x10] sm:$0xff]  ;;  %v547_v30 = vld [vmem:[%s2156_s19 + $0x8] sm:$0xff] }
  0x53   : > { %568 = vmatpush.msra.mxu0 %v559_v18  ;;  %v546_v31 = vld [vmem:[%s2156_s19] sm:$0xff]  ;;  %v2197_v32 = vld [vmem:[#allocation3 + $0x30] sm:$0xff]  ;;  %v2203_v34 = vld [vmem:[#allocation3 + $0x58] sm:$0xff] }
  0x54   : > { %v2200_v33 = vld [vmem:[#allocation3] sm:$0xff]  ;;  %v2206_v35 = vld [vmem:[#allocation3 + $0x18] sm:$0xff]  ;;  %v2209_v36 = vld [vmem:[#allocation3 + $0x50] sm:$0xff] }
  0x55   : > { %569 = vmatpush.msra.mxu0 %v558_v19  ;;  %v2212_v37 = vld [vmem:[#allocation3 + $0x68] sm:$0xff]  ;;  %v2221_v40 = vld [vmem:[#allocation3 + $0x40] sm:$0xff]  ;;  %v2227_v42 = vld [vmem:[#allocation3 + $0x10] sm:$0xff] }
  0x56   : > { %v2215_v38 = vld [vmem:[#allocation3 + $0x8] sm:$0xff]  ;;  %v2224_v41 = vld [vmem:[#allocation3 + $0x20] sm:$0xff]  ;;  %v2230_v43 = vld [vmem:[#allocation3 + $0x38] sm:$0xff] }
  0x57   : > { %570 = vmatpush.msra.mxu0 %v557_v20  ;;  %v2218_v39 = vld [vmem:[#allocation3 + $0x48] sm:$0xff]  ;;  %v2233_v44 = vld [vmem:[#allocation3 + $0x60] sm:$0xff]  ;;  %v2236_v45 = vld [vmem:[#allocation3 + $0x70] sm:$0xff] }
  0x58   : > { %v2239_v46 = vld [vmem:[#allocation3 + $0x78] sm:$0xff]  ;;  %v2242_v47 = vld [vmem:[#allocation3 + $0x28] sm:$0xff]  ;;  %v1721_v49 = vld [vmem:[%s460_s27] ss:$0 sm:$0xff] }
  0x59   : > { %571 = vmatpush.msra.mxu0 %v556_v21 }
  0x5b   : > { %572 = vmatpush.msra.mxu0 %v555_v22 }
  0x5d   : > { %573 = vmatpush.msra.mxu0 %v554_v23 }
  0x5f   : > { %574 = vmatpush.msra.mxu0 %v553_v24 }
  0x61   : > { %575 = vmatpush.msra.mxu0 %v552_v25 }
  0x63   : > { %576 = vmatpush.msra.mxu0 %v551_v26 }
  0x65   : > { %577 = vmatpush.msra.mxu0 %v550_v27 }
  0x67   : > { %578 = vmatpush.msra.mxu0 %v549_v28 }
  0x69   : > { %579 = vmatpush.msra.mxu0 %v548_v29 }
  0x6b   : > { %580 = vmatpush.msra.mxu0 %v547_v30 }
  0x6d   : > { %581 = vmatpush.msra.mxu0 %v546_v31 }
  0x6e   : > { %582 = vmatmul.f32.vlgmr.msra.gmra.mxu0 %v2197_v32 }
  0x76   : > { %585 = vmatmul.f32.gmra.mxu0 %v2200_v33 }
  0x7e   : > { %588 = vmatmul.f32.gmra.mxu0 %v2203_v34 }
  0x86   : > { %591 = vmatmul.f32.gmra.mxu0 %v2206_v35 }
  0x8e   : > { %594 = vmatmul.f32.gmra.mxu0 %v2209_v36 }
  0x96   : > { %597 = vmatmul.f32.gmra.mxu0 %v2212_v37 }
  0x9e   : > { %600 = vmatmul.f32.gmra.mxu0 %v2215_v38 }
  0xa6   : > { %603 = vmatmul.f32.gmra.mxu0 %v2218_v39 }
  0xae   : > { %606 = vmatmul.f32.gmra.mxu0 %v2221_v40 }
  0xb6   : > { %609 = vmatmul.f32.gmra.mxu0 %v2224_v41 }
  0xbe   : > { %612 = vmatmul.f32.gmra.mxu0 %v2227_v42 }
  0xc6   : > { %615 = vmatmul.f32.gmra.mxu0 %v2230_v43 }
  0xce   : > { %618 = vmatmul.f32.gmra.mxu0 %v2233_v44 }
  0xd6   : > { %621 = vmatmul.f32.gmra.mxu0 %v2236_v45 }
  0xde   : > { %624 = vmatmul.f32.gmra.mxu0 %v2239_v46 }
  0xe6   : > { %627 = vmatmul.f32.gmra.mxu0 %v2242_v47 }
  0xeb   : > { %v583_v48 = vpop.f32.mrf.mxu0 }
  0xec   : > { %v584_v51 = vadd.f32 %v1721_v49, %v583_v48 }
  0xf3   : > { %v586_v50 = vpop.f32.mrf.mxu0 }
  0xf4   : > { %v587_v52 = vadd.f32 %v1721_v49, %v586_v50  ;;  %v1507_v50 = vld [vmem:[#allocation8 + $0x8] sm:$0xff] }
  0xf6   : > { %v1525_v53 = vpack.c.bf16 %v587_v52, %v584_v51  ;;  %v1508_v51 = vld [vmem:[#allocation8 + $0x10] sm:$0xff]  ;;  %v1509_v52 = vld [vmem:[#allocation8 + $0x18] sm:$0xff] }
  0xf8   : > { %1526 = vst [vmem:[#allocation4 + $0x28] sm:$0xff] %v1525_v53   ;;  %v948_v53 = vld [vmem:[%s2162_s21 + $0x78] sm:$0xff] }
  0xf9   : > { %969 = vmatpush.msra.mxu2 %v948_v53 }
  0xfb   : > { %v589_v54 = vpop.f32.mrf.mxu0 }
  0xfc   : > { %v590_v56 = vadd.f32 %v1721_v49, %v589_v54  ;;  %v947_v54 = vld [vmem:[%s2162_s21 + $0x70] sm:$0xff] }
  0xfd   : > { %970 = vmatpush.msra.mxu2 %v947_v54 }
  0xff   : > { %v1514_v48 = vld [vmem:[#allocation4 + $0x28] sm:$0xff] }
 0x103   : > { %v592_v55 = vpop.f32.mrf.mxu0 }
 0x104   : > { %v593_v57 = vadd.f32 %v1721_v49, %v592_v55  ;;  %v964_v55 = vld [vmem:[%s2162_s21 + $0xf8] sm:$0xff] }
 0x105   : > { %1034 = vmatpush.msra.mxu3 %v964_v55 }
 0x106   : > { %v1530_v58 = vpack.c.bf16 %v593_v57, %v590_v56  ;;  %v1510_v56 = vld [vmem:[#allocation8 + $0x20] sm:$0xff]  ;;  %v946_v57 = vld [vmem:[%s2162_s21 + $0x68] sm:$0xff] }
 0x107   : > { %971 = vmatpush.msra.mxu2 %v946_v57 }
 0x108   : > { %1562 = vst [vmem:[#allocation4] sm:$0xff] %v1530_v58   ;;  %v963_v58 = vld [vmem:[%s2162_s21 + $0xf0] sm:$0xff] }
 0x109   : > { %1035 = vmatpush.msra.mxu3 %v963_v58 }
 0x10b   : > { %v595_v59 = vpop.f32.mrf.mxu0 }
 0x10c   : > { %v596_v61 = vadd.f32 %v1721_v49, %v595_v59  ;;  %v945_v59 = vld [vmem:[%s2162_s21 + $0x60] sm:$0xff] }
 0x10d   : > { %972 = vmatpush.msra.mxu2 %v945_v59 }
 0x10f   : > { %v1515_v31 = vld [vmem:[#allocation4] sm:$0xff] }
 0x113   : > { %v598_v60 = vpop.f32.mrf.mxu0 }
 0x114   : > { %v599_v62 = vadd.f32 %v1721_v49, %v598_v60  ;;  %v962_v60 = vld [vmem:[%s2162_s21 + $0xe8] sm:$0xff] }
 0x115   : > { %1036 = vmatpush.msra.mxu3 %v962_v60 }
 0x116   : > { %v1535_v63 = vpack.c.bf16 %v599_v62, %v596_v61  ;;  %v944_v61 = vld [vmem:[%s2162_s21 + $0x58] sm:$0xff]  ;;  %v961_v62 = vld [vmem:[%s2162_s21 + $0xe0] sm:$0xff] }
 0x117   : > { %973 = vmatpush.msra.mxu2 %v944_v61  ;;  %1037 = vmatpush.msra.mxu3 %v961_v62 }
 0x118   : > { %1563 = vst [vmem:[#allocation4 + $0x10] sm:$0xff] %v1535_v63   ;;  %v943_v63 = vld [vmem:[%s2162_s21 + $0x50] sm:$0xff] }
 0x119   : > { %974 = vmatpush.msra.mxu2 %v943_v63 }
 0x11b   : > { %v601_v0 = vpop.f32.mrf.mxu0 }
 0x11c   : > { %v602_v2 = vadd.f32 %v1721_v49, %v601_v0  ;;  %v960_v0 = vld [vmem:[%s2162_s21 + $0xd8] sm:$0xff] }
 0x11d   : > { %1038 = vmatpush.msra.mxu3 %v960_v0 }
 0x11f   : > { %v1516_v30 = vld [vmem:[#allocation4 + $0x10] sm:$0xff] }
 0x123   : > { %v604_v1 = vpop.f32.mrf.mxu0 }
 0x124   : > { %v605_v3 = vadd.f32 %v1721_v49, %v604_v1  ;;  %v942_v1 = vld [vmem:[%s2162_s21 + $0x48] sm:$0xff] }
 0x125   : > { %975 = vmatpush.msra.mxu2 %v942_v1 }
 0x126   : > { %v1540_v4 = vpack.c.bf16 %v605_v3, %v602_v2  ;;  %v959_v2 = vld [vmem:[%s2162_s21 + $0xd0] sm:$0xff]  ;;  %v941_v3 = vld [vmem:[%s2162_s21 + $0x40] sm:$0xff] }
 0x127   : > { %1039 = vmatpush.msra.mxu3 %v959_v2  ;;  %976 = vmatpush.msra.mxu2 %v941_v3 }
 0x128   : > { %1564 = vst [vmem:[#allocation4 + $0x20] sm:$0xff] %v1540_v4   ;;  %v958_v4 = vld [vmem:[%s2162_s21 + $0xc8] sm:$0xff] }
 0x129   : > { %1040 = vmatpush.msra.mxu3 %v958_v4 }
 0x12b   : > { %v607_v5 = vpop.f32.mrf.mxu0 }
 0x12c   : > { %v608_v7 = vadd.f32 %v1721_v49, %v607_v5  ;;  %v940_v5 = vld [vmem:[%s2162_s21 + $0x38] sm:$0xff] }
 0x12d   : > { %977 = vmatpush.msra.mxu2 %v940_v5 }
 0x12f   : > { %v1517_v29 = vld [vmem:[#allocation4 + $0x20] sm:$0xff] }
 0x133   : > { %v610_v6 = vpop.f32.mrf.mxu0 }
 0x134   : > { %v611_v8 = vadd.f32 %v1721_v49, %v610_v6  ;;  %v957_v6 = vld [vmem:[%s2162_s21 + $0xc0] sm:$0xff] }
 0x135   : > { %1041 = vmatpush.msra.mxu3 %v957_v6 }
 0x136   : > { %v1545_v9 = vpack.c.bf16 %v611_v8, %v608_v7  ;;  %v1511_v7 = vld [vmem:[#allocation8 + $0x28] sm:$0xff]  ;;  %v939_v8 = vld [vmem:[%s2162_s21 + $0x30] sm:$0xff] }
 0x137   : > { %978 = vmatpush.msra.mxu2 %v939_v8 }
 0x138   : > { %1565 = vst [vmem:[#allocation4 + $0x18] sm:$0xff] %v1545_v9   ;;  %v956_v9 = vld [vmem:[%s2162_s21 + $0xb8] sm:$0xff] }
 0x139   : > { %1042 = vmatpush.msra.mxu3 %v956_v9 }
 0x13b   : > { %v613_v10 = vpop.f32.mrf.mxu0 }
 0x13c   : > { %v614_v12 = vadd.f32 %v1721_v49, %v613_v10  ;;  %v938_v10 = vld [vmem:[%s2162_s21 + $0x28] sm:$0xff] }
 0x13d   : > { %979 = vmatpush.msra.mxu2 %v938_v10 }
 0x13f   : > { %v1518_v28 = vld [vmem:[#allocation4 + $0x18] sm:$0xff] }
 0x143   : > { %v616_v11 = vpop.f32.mrf.mxu0 }
 0x144   : > { %v617_v13 = vadd.f32 %v1721_v49, %v616_v11  ;;  %v955_v11 = vld [vmem:[%s2162_s21 + $0xb0] sm:$0xff] }
 0x145   : > { %1043 = vmatpush.msra.mxu3 %v955_v11 }
 0x146   : > { %v1550_v14 = vpack.c.bf16 %v617_v13, %v614_v12  ;;  %v937_v12 = vld [vmem:[%s2162_s21 + $0x20] sm:$0xff]  ;;  %v954_v13 = vld [vmem:[%s2162_s21 + $0xa8] sm:$0xff] }
 0x147   : > { %980 = vmatpush.msra.mxu2 %v937_v12  ;;  %1044 = vmatpush.msra.mxu3 %v954_v13 }
 0x148   : > { %1566 = vst [vmem:[#allocation4 + $0x8] sm:$0xff] %v1550_v14   ;;  %v936_v14 = vld [vmem:[%s2162_s21 + $0x18] sm:$0xff] }
 0x149   : > { %981 = vmatpush.msra.mxu2 %v936_v14 }
 0x14b   : > { %v619_v15 = vpop.f32.mrf.mxu0 }
 0x14c   : > { %v620_v17 = vadd.f32 %v1721_v49, %v619_v15  ;;  %v953_v15 = vld [vmem:[%s2162_s21 + $0xa0] sm:$0xff] }
 0x14d   : > { %1045 = vmatpush.msra.mxu3 %v953_v15 }
 0x14f   : > { %v1519_v27 = vld [vmem:[#allocation4 + $0x8] sm:$0xff] }
 0x153   : > { %v622_v16 = vpop.f32.mrf.mxu0 }
 0x154   : > { %v623_v18 = vadd.f32 %v1721_v49, %v622_v16  ;;  %v935_v16 = vld [vmem:[%s2162_s21 + $0x10] sm:$0xff] }
 0x155   : > { %982 = vmatpush.msra.mxu2 %v935_v16 }
 0x156   : > { %v1555_v19 = vpack.c.bf16 %v623_v18, %v620_v17  ;;  %v952_v17 = vld [vmem:[%s2162_s21 + $0x98] sm:$0xff]  ;;  %v934_v18 = vld [vmem:[%s2162_s21 + $0x8] sm:$0xff] }
 0x157   : > { %1046 = vmatpush.msra.mxu3 %v952_v17  ;;  %983 = vmatpush.msra.mxu2 %v934_v18 }
 0x158   : > { %1567 = vst [vmem:[#allocation4 + $0x38] sm:$0xff] %v1555_v19   ;;  %v951_v19 = vld [vmem:[%s2162_s21 + $0x90] sm:$0xff] }
 0x159   : > { %1047 = vmatpush.msra.mxu3 %v951_v19 }
 0x15b   : > { %v625_v20 = vpop.f32.mrf.mxu0 }
 0x15c   : > { %v626_v22 = vadd.f32 %v1721_v49, %v625_v20  ;;  %v933_v20 = vld [vmem:[%s2162_s21] sm:$0xff] }
 0x15d   : > { %984 = vmatpush.msra.mxu2 %v933_v20 }
 0x15e   : > { %985 = vmatmul.f32.vlgmr.msra.gmra.mxu2 %v2197_v32 }
 0x15f   : > { %v1520_v26 = vld [vmem:[#allocation4 + $0x38] sm:$0xff] }
 0x163   : > { %v628_v21 = vpop.f32.mrf.mxu0 }
 0x164   : > { %v629_v23 = vadd.f32 %v1721_v49, %v628_v21  ;;  %v1506_v49 = vld [vmem:[#allocation8] sm:$0xff]  ;;  %v950_v21 = vld [vmem:[%s2162_s21 + $0x88] sm:$0xff] }
 0x165   : > { %1048 = vmatpush.msra.mxu3 %v950_v21 }
 0x166   : > { %v1560_v24 = vpack.c.bf16 %v629_v23, %v626_v22  ;;  %v1512_v22 = vld [vmem:[#allocation8 + $0x30] sm:$0xff]  ;;  %v949_v23 = vld [vmem:[%s2162_s21 + $0x80] sm:$0xff]  ;;  %988 = vmatmul.f32.gmra.mxu2 %v2200_v33 }
 0x167   : > { %1049 = vmatpush.msra.mxu3 %v949_v23 }
 0x168   : > { %1568 = vst [vmem:[#allocation4 + $0x30] sm:$0xff] %v1560_v24   ;;  %v1513_v24 = vld [vmem:[#allocation8 + $0x38] sm:$0xff] }
 0x16e   : > { %991 = vmatmul.f32.gmra.mxu2 %v2203_v34 }
 0x16f   : > { %v1521_v25 = vld [vmem:[#allocation4 + $0x30] sm:$0xff] }
 0x170   : > { %815 = vmatpush.bf16.msra.mxu1 %v1521_v25 }
 0x174   : > { %816 = vmatpush.bf16.msra.mxu1 %v1520_v26 }
 0x176   : > { %994 = vmatmul.f32.gmra.mxu2 %v2206_v35 }
 0x178   : > { %817 = vmatpush.bf16.msra.mxu1 %v1519_v27 }
 0x17c   : > { %818 = vmatpush.bf16.msra.mxu1 %v1518_v28 }
 0x17e   : > { %997 = vmatmul.f32.gmra.mxu2 %v2209_v36 }
 0x180   : > { %819 = vmatpush.bf16.msra.mxu1 %v1517_v29 }
 0x184   : > { %820 = vmatpush.bf16.msra.mxu1 %v1516_v30 }
 0x186   : > { %1000 = vmatmul.f32.gmra.mxu2 %v2212_v37 }
 0x188   : > { %821 = vmatpush.bf16.msra.mxu1 %v1515_v31 }
 0x18c   : > { %822 = vmatpush.bf16.msra.mxu1 %v1514_v48 }
 0x18e   : > { %1003 = vmatmul.f32.gmra.mxu2 %v2215_v38 }
 0x18f   : > { %823 = vmatmul.bf16.vlgmr.msra.gmra.mxu1 %v1506_v49 }
 0x196   : > { %1006 = vmatmul.f32.gmra.mxu2 %v2218_v39 }
 0x19e   : > { %1009 = vmatmul.f32.gmra.mxu2 %v2221_v40 }
 0x19f   : > { %828 = vmatmul.bf16.gmra.mxu1 %v1507_v50 }
 0x1a6   : > { %1012 = vmatmul.f32.gmra.mxu2 %v2224_v41 }
 0x1ae   : > { %1015 = vmatmul.f32.gmra.mxu2 %v2227_v42 }
 0x1af   : > { %833 = vmatmul.bf16.gmra.mxu1 %v1508_v51 }
 0x1b6   : > { %1018 = vmatmul.f32.gmra.mxu2 %v2230_v43 }
 0x1be   : > { %1021 = vmatmul.f32.gmra.mxu2 %v2233_v44 }
 0x1bf   : > { %838 = vmatmul.bf16.gmra.mxu1 %v1509_v52 }
 0x1c6   : > { %1024 = vmatmul.f32.gmra.mxu2 %v2236_v45 }
 0x1ce   : > { %1027 = vmatmul.f32.gmra.mxu2 %v2239_v46  ;;  %v2303_v46 = vld [vmem:[%s463_s22] ss:$0 sm:$0xff] }
 0x1cf   : > { %843 = vmatmul.bf16.gmra.mxu1 %v1510_v56 }
 0x1d6   : > { %1030 = vmatmul.f32.gmra.mxu2 %v2242_v47 }
 0x1df   : > { %848 = vmatmul.bf16.gmra.mxu1 %v1511_v7 }
 0x1e1   : > { %v986_v43 = vpop.f32.mrf.mxu2 }
 0x1e2   : > { %v987_v30 = vadd.f32 %v2303_v46, %v986_v43 }
 0x1e9   : > { %v989_v44 = vpop.f32.mrf.mxu2 }
 0x1ea   : > { %v990_v51 = vadd.f32 %v2303_v46, %v989_v44 }
 0x1ef   : > { %853 = vmatmul.bf16.gmra.mxu1 %v1512_v22 }
 0x1f1   : > { %v992_v45 = vpop.f32.mrf.mxu2 }
 0x1f2   : > { %v993_v55 = vadd.f32 %v2303_v46, %v992_v45 }
 0x1f9   : > { %v995_v47 = vpop.f32.mrf.mxu2 }
 0x1fa   : > { %v996_v60 = vadd.f32 %v2303_v46, %v995_v47 }
 0x1ff   : > { %858 = vmatmul.bf16.gmra.mxu1 %v1513_v24 }
 0x201   : > { %v998_v50 = vpop.f32.mrf.mxu2 }
 0x202   : > { %v999_v1 = vadd.f32 %v2303_v46, %v998_v50 }
 0x209   : > { %v1001_v56 = vpop.f32.mrf.mxu2 }
 0x20a   : > { %v1002_v6 = vadd.f32 %v2303_v46, %v1001_v56 }
 0x20c   : > { %v824_v25 = vpop.f32.mrf.mxu1 }
 0x20d   : > { %1050 = vmatmul.f32.vlgmr.msra.gmra.mxu3 %v824_v25 }
 0x211   : > { %v1004_v62 = vpop.f32.mrf.mxu2 }
 0x212   : > { %v1005_v11 = vadd.f32 %v2303_v46, %v1004_v62 }
 0x214   : > { %v826_v26 = vpop.f32.mrf.mxu1 }
 0x215   : > { %1053 = vmatmul.f32.gmra.mxu3 %v826_v26 }
 0x219   : > { %v1007_v4 = vpop.f32.mrf.mxu2 }
 0x21a   : > { %v1008_v15 = vadd.f32 %v2303_v46, %v1007_v4 }
 0x21c   : > { %v829_v32 = vpop.f32.mrf.mxu1 }
 0x21d   : > { %1056 = vmatmul.f32.gmra.mxu3 %v829_v32 }
 0x221   : > { %v1010_v10 = vpop.f32.mrf.mxu2 }
 0x222   : > { %v1011_v20 = vadd.f32 %v2303_v46, %v1010_v10 }
 0x224   : > { %v831_v33 = vpop.f32.mrf.mxu1 }
 0x225   : > { %1059 = vmatmul.f32.gmra.mxu3 %v831_v33 }
 0x229   : > { %v1013_v16 = vpop.f32.mrf.mxu2 }
 0x22a   : > { %v1014_v25 = vadd.f32 %v2303_v46, %v1013_v16 }
 0x22c   : > { %v834_v34 = vpop.f32.mrf.mxu1 }
 0x22d   : > { %1062 = vmatmul.f32.gmra.mxu3 %v834_v34 }
 0x231   : > { %v1016_v22 = vpop.f32.mrf.mxu2 }
 0x234   : > { %v836_v35 = vpop.f32.mrf.mxu1 }
 0x235   : > { %1065 = vmatmul.f32.gmra.mxu3 %v836_v35  ;;  %v1017_v35 = vadd.f32 %v2303_v46, %v1016_v22 }
 0x239   : > { %v1019_v33 = vpop.f32.mrf.mxu2 }
 0x23c   : > { %v839_v36 = vpop.f32.mrf.mxu1 }
 0x23d   : > { %1068 = vmatmul.f32.gmra.mxu3 %v839_v36 }
 0x244   : > { %v841_v37 = vpop.f32.mrf.mxu1 }
 0x245   : > { %1071 = vmatmul.f32.gmra.mxu3 %v841_v37 }
 0x24c   : > { %v844_v38 = vpop.f32.mrf.mxu1 }
 0x24d   : > { %1074 = vmatmul.f32.gmra.mxu3 %v844_v38 }
 0x254   : > { %v846_v39 = vpop.f32.mrf.mxu1 }
 0x255   : > { %1077 = vmatmul.f32.gmra.mxu3 %v846_v39  ;;  %v1022_v39 = vpop.f32.mrf.mxu2 }
 0x25c   : > { %v849_v40 = vpop.f32.mrf.mxu1 }
 0x25d   : > { %1080 = vmatmul.f32.gmra.mxu3 %v849_v40  ;;  %v1020_v40 = vadd.f32 %v2303_v46, %v1019_v33  ;;  %v1025_v44 = vpop.f32.mrf.mxu2 }
 0x25e   : > { %v1026_v47 = vadd.f32 %v2303_v46, %v1025_v44 }
 0x264   : > { %v851_v41 = vpop.f32.mrf.mxu1 }
 0x265   : > { %1083 = vmatmul.f32.gmra.mxu3 %v851_v41 }
 0x26c   : > { %v854_v42 = vpop.f32.mrf.mxu1 }
 0x26d   : > { %1086 = vmatmul.f32.gmra.mxu3 %v854_v42 }
 0x274   : > { %v856_v27 = vpop.f32.mrf.mxu1 }
 0x275   : > { %1089 = vmatmul.f32.gmra.mxu3 %v856_v27  ;;  %v1023_v27 = vadd.f32 %v2303_v46, %v1022_v39 }
 0x27c   : > { %v859_v28 = vpop.f32.mrf.mxu1 }
 0x27d   : > { %1092 = vmatmul.f32.gmra.mxu3 %v859_v28 }
 0x284   : > { %v861_v29 = vpop.f32.mrf.mxu1 }
 0x285   : > { %1095 = vmatmul.f32.gmra.mxu3 %v861_v29 }
 0x290   : > { %v1051_v31 = vpop.f32.mrf.mxu3 }
 0x291   : > { %v1052_v48 = vadd.f32 %v1051_v31, %v987_v30  ;;  %v1028_v31 = vpop.f32.mrf.mxu2 }
 0x293   : > { %v2306_v49 = vmax.f32 %v1052_v48, 0.0 }
 0x298   : > { %v1054_v52 = vpop.f32.mrf.mxu3 }
 0x299   : > { %v1055_v53 = vadd.f32 %v1054_v52, %v990_v51  ;;  %v1029_v51 = vadd.f32 %v2303_v46, %v1028_v31 }
 0x29b   : > { %v2309_v54 = vmax.f32 %v1055_v53, 0.0 }
 0x2a0   : > { %v1057_v57 = vpop.f32.mrf.mxu3 }
 0x2a1   : > { %v1058_v58 = vadd.f32 %v1057_v57, %v993_v55  ;;  %v1031_v55 = vpop.f32.mrf.mxu2 }
 0x2a2   : > { %v1032_v57 = vadd.f32 %v2303_v46, %v1031_v55 }
 0x2a3   : > { %v2312_v59 = vmax.f32 %v1058_v58, 0.0 }
 0x2a8   : > { %v1060_v61 = vpop.f32.mrf.mxu3 }
 0x2a9   : > { %v1061_v63 = vadd.f32 %v1060_v61, %v996_v60 }
 0x2ab   : > { %v2315_v0 = vmax.f32 %v1061_v63, 0.0 }
 0x2b0   : > { %v1063_v2 = vpop.f32.mrf.mxu3 }
 0x2b1   : > { %v1064_v3 = vadd.f32 %v1063_v2, %v999_v1 }
 0x2b3   : > { %v2318_v5 = vmax.f32 %v1064_v3, 0.0 }
 0x2b8   : > { %v1066_v7 = vpop.f32.mrf.mxu3 }
 0x2b9   : > { %v1067_v8 = vadd.f32 %v1066_v7, %v1002_v6 }
 0x2bb   : > { %v2321_v9 = vmax.f32 %v1067_v8, 0.0 }
 0x2c0   : > { %v1069_v12 = vpop.f32.mrf.mxu3 }
 0x2c1   : > { %v1070_v13 = vadd.f32 %v1069_v12, %v1005_v11 }
 0x2c3   : > { %v2324_v14 = vmax.f32 %v1070_v13, 0.0 }
 0x2c8   : > { %v1072_v17 = vpop.f32.mrf.mxu3 }
 0x2c9   : > { %v1073_v18 = vadd.f32 %v1072_v17, %v1008_v15 }
 0x2cb   : > { %v2327_v19 = vmax.f32 %v1073_v18, 0.0 }
 0x2d0   : > { %v1075_v21 = vpop.f32.mrf.mxu3 }
 0x2d1   : > { %v1076_v23 = vadd.f32 %v1075_v21, %v1011_v20 }
 0x2d3   : > { %v2330_v24 = vmax.f32 %v1076_v23, 0.0 }
 0x2d8   : > { %v1078_v26 = vpop.f32.mrf.mxu3 }
 0x2d9   : > { %v1079_v32 = vadd.f32 %v1078_v26, %v1014_v25 }
 0x2db   : > { %v2333_v34 = vmax.f32 %v1079_v32, 0.0 }
 0x2e0   : > { %v1081_v36 = vpop.f32.mrf.mxu3 }
 0x2e1   : > { %v1082_v37 = vadd.f32 %v1081_v36, %v1017_v35 }
 0x2e3   : > { %v2336_v38 = vmax.f32 %v1082_v37, 0.0 }
 0x2e8   : > { %v1084_v41 = vpop.f32.mrf.mxu3 }
 0x2e9   : > { %v1085_v42 = vadd.f32 %v1084_v41, %v1020_v40 }
 0x2eb   : > { %v2339_v43 = vmax.f32 %v1085_v42, 0.0 }
 0x2f0   : > { %v1087_v28 = vpop.f32.mrf.mxu3 }
 0x2f1   : > { %v1088_v45 = vadd.f32 %v1087_v28, %v1023_v27 }
 0x2f3   : > { %v2342_v29 = vmax.f32 %v1088_v45, 0.0 }
 0x2f8   : > { %v1090_v30 = vpop.f32.mrf.mxu3 }
 0x2f9   : > { %v1091_v48 = vadd.f32 %v1090_v30, %v1026_v47 }
 0x2fb   : > { %v2345_v50 = vmax.f32 %v1091_v48, 0.0 }
 0x300   : > { %v1093_v52 = vpop.f32.mrf.mxu3 }
 0x301   : > { %v1094_v53 = vadd.f32 %v1093_v52, %v1029_v51 }
 0x303   : > { %v2348_v56 = vmax.f32 %v1094_v53, 0.0 }
 0x307   : > { %1118 = sbr.rel (%p1496_p1) target bundleno = 972 (0x3cc), region = 92 }
 0x308   : > { %v1096_v58 = vpop.f32.mrf.mxu3 }
 0x309   : > { %v1097_v60 = vadd.f32 %v1096_v58, %v1032_v57 }
 0x30b   : > { %v2351_v61 = vmax.f32 %v1097_v60, 0.0 }
 0x30c   : > { %v1134_v62 = vld [vmem:[#allocation12 + $0x78] sm:$0xff]  ;;  %v1133_v63 = vld [vmem:[#allocation12 + $0x70] sm:$0xff]  ;;  %v1132_v1 = vld [vmem:[#allocation12 + $0x68] sm:$0xff] }
 0x30d   : > { %1570 = vmatpush.msra.mxu2 %v1134_v62  ;;  %1571 = vmatpush.msra.mxu3 %v1134_v62  ;;  %v1131_v2 = vld [vmem:[#allocation12 + $0x60] sm:$0xff]  ;;  %v1130_v46 = vld [vmem:[#allocation12 + $0x58] sm:$0xff]  ;;  %v1129_v3 = vld [vmem:[#allocation12 + $0x50] sm:$0xff] }
 0x30e   : > { %1139 = vmatpush.msra.mxu0 %v1134_v62  ;;  %1569 = vmatpush.msra.mxu1 %v1134_v62  ;;  %v1128_v4 = vld [vmem:[#allocation12 + $0x48] sm:$0xff]  ;;  %v1127_v6 = vld [vmem:[#allocation12 + $0x40] sm:$0xff]  ;;  %v1126_v7 = vld [vmem:[#allocation12 + $0x38] sm:$0xff] }
 0x30f   : > { %1573 = vmatpush.msra.mxu2 %v1133_v63  ;;  %1574 = vmatpush.msra.mxu3 %v1133_v63  ;;  %v1125_v8 = vld [vmem:[#allocation12 + $0x30] sm:$0xff]  ;;  %v1124_v10 = vld [vmem:[#allocation12 + $0x28] sm:$0xff]  ;;  %v1123_v11 = vld [vmem:[#allocation12 + $0x20] sm:$0xff] }
 0x310   : > { %1140 = vmatpush.msra.mxu0 %v1133_v63  ;;  %1572 = vmatpush.msra.mxu1 %v1133_v63  ;;  %v1122_v12 = vld [vmem:[#allocation12 + $0x18] sm:$0xff]  ;;  %v1121_v13 = vld [vmem:[#allocation12 + $0x10] sm:$0xff]  ;;  %v1120_v15 = vld [vmem:[#allocation12 + $0x8] sm:$0xff] }
 0x311   : > { %1576 = vmatpush.msra.mxu2 %v1132_v1  ;;  %1577 = vmatpush.msra.mxu3 %v1132_v1  ;;  %v1119_v16 = vld [vmem:[#allocation12] sm:$0xff] }
 0x312   : > { %1141 = vmatpush.msra.mxu0 %v1132_v1  ;;  %1575 = vmatpush.msra.mxu1 %v1132_v1  ;;  %v1723_v17 = vld [vmem:[%s2435_s7] ss:$0 sm:$0xff] }
 0x313   : > { %1579 = vmatpush.msra.mxu2 %v1131_v2  ;;  %1580 = vmatpush.msra.mxu3 %v1131_v2 }
 0x314   : > { %1142 = vmatpush.msra.mxu0 %v1131_v2  ;;  %1578 = vmatpush.msra.mxu1 %v1131_v2 }
 0x315   : > { %1582 = vmatpush.msra.mxu2 %v1130_v46  ;;  %1583 = vmatpush.msra.mxu3 %v1130_v46 }
 0x316   : > { %1143 = vmatpush.msra.mxu0 %v1130_v46  ;;  %1581 = vmatpush.msra.mxu1 %v1130_v46 }
 0x317   : > { %1585 = vmatpush.msra.mxu2 %v1129_v3  ;;  %1586 = vmatpush.msra.mxu3 %v1129_v3 }
 0x318   : > { %1144 = vmatpush.msra.mxu0 %v1129_v3  ;;  %1584 = vmatpush.msra.mxu1 %v1129_v3 }
 0x319   : > { %1588 = vmatpush.msra.mxu2 %v1128_v4  ;;  %1589 = vmatpush.msra.mxu3 %v1128_v4 }
 0x31a   : > { %1145 = vmatpush.msra.mxu0 %v1128_v4  ;;  %1587 = vmatpush.msra.mxu1 %v1128_v4 }
 0x31b   : > { %1591 = vmatpush.msra.mxu2 %v1127_v6  ;;  %1592 = vmatpush.msra.mxu3 %v1127_v6 }
 0x31c   : > { %1146 = vmatpush.msra.mxu0 %v1127_v6  ;;  %1590 = vmatpush.msra.mxu1 %v1127_v6 }
 0x31d   : > { %1594 = vmatpush.msra.mxu2 %v1126_v7  ;;  %1595 = vmatpush.msra.mxu3 %v1126_v7 }
 0x31e   : > { %1147 = vmatpush.msra.mxu0 %v1126_v7  ;;  %1593 = vmatpush.msra.mxu1 %v1126_v7 }
 0x31f   : > { %1597 = vmatpush.msra.mxu2 %v1125_v8  ;;  %1598 = vmatpush.msra.mxu3 %v1125_v8 }
 0x320   : > { %1148 = vmatpush.msra.mxu0 %v1125_v8  ;;  %1596 = vmatpush.msra.mxu1 %v1125_v8 }
 0x321   : > { %1600 = vmatpush.msra.mxu2 %v1124_v10  ;;  %1601 = vmatpush.msra.mxu3 %v1124_v10 }
 0x322   : > { %1149 = vmatpush.msra.mxu0 %v1124_v10  ;;  %1599 = vmatpush.msra.mxu1 %v1124_v10 }
 0x323   : > { %1603 = vmatpush.msra.mxu2 %v1123_v11  ;;  %1604 = vmatpush.msra.mxu3 %v1123_v11 }
 0x324   : > { %1150 = vmatpush.msra.mxu0 %v1123_v11  ;;  %1602 = vmatpush.msra.mxu1 %v1123_v11 }
 0x325   : > { %1606 = vmatpush.msra.mxu2 %v1122_v12  ;;  %1607 = vmatpush.msra.mxu3 %v1122_v12 }
 0x326   : > { %1151 = vmatpush.msra.mxu0 %v1122_v12  ;;  %1605 = vmatpush.msra.mxu1 %v1122_v12 }
 0x327   : > { %1609 = vmatpush.msra.mxu2 %v1121_v13  ;;  %1610 = vmatpush.msra.mxu3 %v1121_v13 }
 0x328   : > { %1152 = vmatpush.msra.mxu0 %v1121_v13  ;;  %1608 = vmatpush.msra.mxu1 %v1121_v13 }
 0x329   : > { %1612 = vmatpush.msra.mxu2 %v1120_v15  ;;  %1613 = vmatpush.msra.mxu3 %v1120_v15 }
 0x32a   : > { %1153 = vmatpush.msra.mxu0 %v1120_v15  ;;  %1611 = vmatpush.msra.mxu1 %v1120_v15 }
 0x32b   : > { %1615 = vmatpush.msra.mxu2 %v1119_v16  ;;  %1616 = vmatpush.msra.mxu3 %v1119_v16 }
 0x32c   : > { %1179 = vmatmul.f32.vlgmr.msra.gmra.mxu2 %v2330_v24  ;;  %1191 = vmatmul.f32.vlgmr.msra.gmra.mxu3 %v2342_v29 }
 0x32d   : > { %1154 = vmatpush.msra.mxu0 %v1119_v16  ;;  %1614 = vmatpush.msra.mxu1 %v1119_v16 }
 0x32e   : > { %1155 = vmatmul.f32.vlgmr.msra.gmra.mxu0 %v2306_v49  ;;  %1167 = vmatmul.f32.vlgmr.msra.gmra.mxu1 %v2318_v5 }
 0x334   : > { %1182 = vmatmul.f32.gmra.mxu2 %v2333_v34  ;;  %1194 = vmatmul.f32.gmra.mxu3 %v2345_v50 }
 0x336   : > { %1158 = vmatmul.f32.gmra.mxu0 %v2309_v54  ;;  %1170 = vmatmul.f32.gmra.mxu1 %v2321_v9 }
 0x33c   : > { %1185 = vmatmul.f32.gmra.mxu2 %v2336_v38  ;;  %1197 = vmatmul.f32.gmra.mxu3 %v2348_v56 }
 0x33e   : > { %1161 = vmatmul.f32.gmra.mxu0 %v2312_v59  ;;  %1173 = vmatmul.f32.gmra.mxu1 %v2324_v14 }
 0x344   : > { %1188 = vmatmul.f32.gmra.mxu2 %v2339_v43  ;;  %1200 = vmatmul.f32.gmra.mxu3 %v2351_v61 }
 0x346   : > { %1164 = vmatmul.f32.gmra.mxu0 %v2315_v0  ;;  %1176 = vmatmul.f32.gmra.mxu1 %v2327_v19 }
 0x3ab   : > { %v1156_v18 = vpop.f32.mrf.mxu0  ;;  %v1168_v20 = vpop.f32.mrf.mxu1 }
 0x3ac   : > { %v1157_v21 = vadd.f32 %v1723_v17, %v1156_v18  ;;  %v1169_v22 = vadd.f32 %v1723_v17, %v1168_v20 }
 0x3ae   : > { %1204 = vst [vmem:[#allocation13] sm:$0xff] %v1157_v21 }
 0x3af   : > { %1208 = vst [vmem:[#allocation13 + $0x20] sm:$0xff] %v1169_v22  ;;  %v1180_v23 = vpop.f32.mrf.mxu2  ;;  %v1192_v25 = vpop.f32.mrf.mxu3 }
 0x3b0   : > { %v1181_v26 = vadd.f32 %v1723_v17, %v1180_v23  ;;  %v1193_v32 = vadd.f32 %v1723_v17, %v1192_v25 }
 0x3b2   : > { %1212 = vst [vmem:[#allocation13 + $0x40] sm:$0xff] %v1181_v26 }
 0x3b3   : > { %1216 = vst [vmem:[#allocation13 + $0x60] sm:$0xff] %v1193_v32  ;;  %v1159_v33 = vpop.f32.mrf.mxu0  ;;  %v1171_v35 = vpop.f32.mrf.mxu1 }
 0x3b4   : > { %v1160_v36 = vadd.f32 %v1723_v17, %v1159_v33  ;;  %v1172_v37 = vadd.f32 %v1723_v17, %v1171_v35 }
 0x3b6   : > { %1205 = vst [vmem:[#allocation13 + $0x8] sm:$0xff] %v1160_v36 }
 0x3b7   : > { %1209 = vst [vmem:[#allocation13 + $0x28] sm:$0xff] %v1172_v37  ;;  %v1183_v39 = vpop.f32.mrf.mxu2  ;;  %v1195_v40 = vpop.f32.mrf.mxu3 }
 0x3b8   : > { %v1184_v41 = vadd.f32 %v1723_v17, %v1183_v39  ;;  %v1196_v42 = vadd.f32 %v1723_v17, %v1195_v40 }
 0x3ba   : > { %1213 = vst [vmem:[#allocation13 + $0x48] sm:$0xff] %v1184_v41 }
 0x3bb   : > { %1217 = vst [vmem:[#allocation13 + $0x68] sm:$0xff] %v1196_v42  ;;  %v1162_v27 = vpop.f32.mrf.mxu0  ;;  %v1174_v44 = vpop.f32.mrf.mxu1 }
 0x3bc   : > { %v1163_v28 = vadd.f32 %v1723_v17, %v1162_v27  ;;  %v1175_v45 = vadd.f32 %v1723_v17, %v1174_v44 }
 0x3be   : > { %1206 = vst [vmem:[#allocation13 + $0x10] sm:$0xff] %v1163_v28 }
 0x3bf   : > { %1210 = vst [vmem:[#allocation13 + $0x30] sm:$0xff] %v1175_v45  ;;  %v1186_v47 = vpop.f32.mrf.mxu2  ;;  %v1198_v30 = vpop.f32.mrf.mxu3 }
 0x3c0   : > { %v1187_v31 = vadd.f32 %v1723_v17, %v1186_v47  ;;  %v1199_v48 = vadd.f32 %v1723_v17, %v1198_v30 }
 0x3c2   : > { %1214 = vst [vmem:[#allocation13 + $0x50] sm:$0xff] %v1187_v31 }
 0x3c3   : > { %1218 = vst [vmem:[#allocation13 + $0x70] sm:$0xff] %v1199_v48  ;;  %v1165_v51 = vpop.f32.mrf.mxu0  ;;  %v1177_v52 = vpop.f32.mrf.mxu1 }
 0x3c4   : > { %v1166_v53 = vadd.f32 %v1723_v17, %v1165_v51  ;;  %v1178_v55 = vadd.f32 %v1723_v17, %v1177_v52 }
 0x3c6   : > { %1207 = vst [vmem:[#allocation13 + $0x18] sm:$0xff] %v1166_v53 }
 0x3c7   : > { %1211 = vst [vmem:[#allocation13 + $0x38] sm:$0xff] %v1178_v55  ;;  %v1189_v57 = vpop.f32.mrf.mxu2  ;;  %v1201_v58 = vpop.f32.mrf.mxu3 }
 0x3c8   : > { %v1190_v60 = vadd.f32 %v1723_v17, %v1189_v57  ;;  %v1202_v62 = vadd.f32 %v1723_v17, %v1201_v58 }
 0x3ca   : > { %1215 = vst [vmem:[#allocation13 + $0x58] sm:$0xff] %v1190_v60 }
 0x3cb   : > { %1219 = vst [vmem:[#allocation13 + $0x78] sm:$0xff] %v1202_v62 }
 0x3cc PF: > { %p1497_p4 = scmp.ge.s32.totalorder %s1960_s30, 1 }
 0x3ce   : > { %1223 = sbr.rel (%p1497_p4) target bundleno = 1011 (0x3f3), region = 96 }
 0x3d3   : > { %1224 = vst [vmem:[#allocation3 + $0x30] sm:$0xff] %v2306_v49 }
 0x3d4   : > { %1225 = vst [vmem:[#allocation3] sm:$0xff] %v2309_v54 }
 0x3d5   : > { %1226 = vst [vmem:[#allocation3 + $0x58] sm:$0xff] %v2312_v59 }
 0x3d6   : > { %1227 = vst [vmem:[#allocation3 + $0x18] sm:$0xff] %v2315_v0 }
 0x3d7   : > { %1228 = vst [vmem:[#allocation3 + $0x50] sm:$0xff] %v2318_v5 }
 0x3d8   : > { %1229 = vst [vmem:[#allocation3 + $0x68] sm:$0xff] %v2321_v9 }
 0x3d9   : > { %1230 = vst [vmem:[#allocation3 + $0x8] sm:$0xff] %v2324_v14 }
 0x3da   : > { %1231 = vst [vmem:[#allocation3 + $0x48] sm:$0xff] %v2327_v19 }
 0x3db   : > { %1232 = vst [vmem:[#allocation3 + $0x40] sm:$0xff] %v2330_v24 }
 0x3dc   : > { %1233 = vst [vmem:[#allocation3 + $0x20] sm:$0xff] %v2333_v34 }
 0x3dd   : > { %1234 = vst [vmem:[#allocation3 + $0x10] sm:$0xff] %v2336_v38 }
 0x3de   : > { %1235 = vst [vmem:[#allocation3 + $0x38] sm:$0xff] %v2339_v43 }
 0x3df   : > { %1236 = vst [vmem:[#allocation3 + $0x60] sm:$0xff] %v2342_v29 }
 0x3e0   : > { %1237 = vst [vmem:[#allocation3 + $0x70] sm:$0xff] %v2345_v50 }
 0x3e1   : > { %1238 = vst [vmem:[#allocation3 + $0x78] sm:$0xff] %v2348_v56 }
 0x3e2   : > { %1239 = vst [vmem:[#allocation3 + $0x28] sm:$0xff] %v2351_v61 }
 0x3e3   : > { %1240 = vst [vmem:[#allocation13] sm:$0xff] %v2306_v49 }
 0x3e4   : > { %1241 = vst [vmem:[#allocation13 + $0x8] sm:$0xff] %v2309_v54 }
 0x3e5   : > { %1242 = vst [vmem:[#allocation13 + $0x10] sm:$0xff] %v2312_v59 }
 0x3e6   : > { %1243 = vst [vmem:[#allocation13 + $0x18] sm:$0xff] %v2315_v0 }
 0x3e7   : > { %1244 = vst [vmem:[#allocation13 + $0x20] sm:$0xff] %v2318_v5 }
 0x3e8   : > { %1245 = vst [vmem:[#allocation13 + $0x28] sm:$0xff] %v2321_v9 }
 0x3e9   : > { %1246 = vst [vmem:[#allocation13 + $0x30] sm:$0xff] %v2324_v14 }
 0x3ea   : > { %1247 = vst [vmem:[#allocation13 + $0x38] sm:$0xff] %v2327_v19 }
 0x3eb   : > { %1248 = vst [vmem:[#allocation13 + $0x40] sm:$0xff] %v2330_v24 }
 0x3ec   : > { %1249 = vst [vmem:[#allocation13 + $0x48] sm:$0xff] %v2333_v34 }
 0x3ed   : > { %1250 = vst [vmem:[#allocation13 + $0x50] sm:$0xff] %v2336_v38 }
 0x3ee   : > { %1251 = vst [vmem:[#allocation13 + $0x58] sm:$0xff] %v2339_v43 }
 0x3ef   : > { %1252 = vst [vmem:[#allocation13 + $0x60] sm:$0xff] %v2342_v29 }
 0x3f0   : > { %1253 = vst [vmem:[#allocation13 + $0x68] sm:$0xff] %v2345_v50 }
 0x3f1   : > { %1254 = vst [vmem:[#allocation13 + $0x70] sm:$0xff] %v2348_v56 }
 0x3f2   : > { %1255 = vst [vmem:[#allocation13 + $0x78] sm:$0xff] %v2351_v61 }
 0x3f3 PF: > { %p1661_p5 = scmp.eq.s32.totalorder %s2054_s11, 1  ;;  %s1266_s2 = sshll.u32 %s2436_s8, 4  ;;  %s1267_s2 = int_to_ptr.hbm [resolvable:$true] %s1266_s2 }
 0x3f4   : > { %s1977_s6 = smov [#allocation13]   ;;  %s1978_s19 = smov 128  }
 0x3f5   : > { %s1264_s16 = sshll.u32 %s1977_s6, 4  ;;  %s1979_s24 = smov 8   ;;  %s1265_s16 = int_to_ptr.vmem [resolvable:$true] %s1264_s16 }
 0x3f6   : > { %1634 = dma.vmem_to_hbm [thread:$0]  (%p1661_p5), %s1265_s16, 2048, %s1267_s2, [#allocation7], %s1978_s19, %s1978_s19, %s1979_s24  }
 0x3f7   : > { %1943 = dma.done.wait (%p1661_p5), [#allocation7], 2048  }
 0x3f8   : > { %1945 = vsyncadd (%p1661_p5), [#allocation7], 4294965248 }
 0x3f9 PF: > { %s21_s10 = sadd.s32 1, %s1968_s10   ;;  %s2459_s11 = sld [smem:[#allocation20_spill]] }
 0x3fa   : > { %p18_p6 = scmp.ge.s32.totalorder %s21_s10, 4   ;;  %s2460_s21 = sld [smem:[#allocation19_spill]] }
 0x3fb   : > { %s2461_s27 = smov %s1952_s28  ;;  %s2462_s28 = smov %s1956_s29 }
 0x3fc   : > { %s2464_s30 = smov %s1964_s9  ;;  %20 = sbr.rel (!%p18_p6) target bundleno = 10 (0xa), region = 147 }
 0x3ff   : > { %s2463_s29 = smov %s2459_s11 }
 0x400   : > { %s2465_s9 = smov %s2460_s21 }
 0x401   :  { %1283 = vsyncpa [#allocation6], 1 }
 0x402   :  { %1285 = vsyncpa [#allocation6 + $0x1], 1 }
 0x403   :  { %1286 = vsyncpa [#allocation9], 1 }
 0x404   :  { %1287 = vsyncpa [#allocation7], 1 }
 0x405   :  { %1289 = vsyncpa [#allocation7 + $0x1], 1 }

</bundles_post_ra>
